<compile_context>
chip_gen: v7x
topology: tpu7x:2x2x1
jax: 0.10.0
libtpu: 0.0.40
codegen_flags: <defaults>
</compile_context>

<pallas_src>
import math

import jax
import jax.numpy as jnp
import numpy as np
from jax.experimental import pallas as pl
from jax.experimental.pallas import tpu as pltpu

HIDDEN = 32
W_SCALE = 30.0 * 2.0 * math.pi   # 30 * pi * 2
V_SCALE = 3.0
EPS = 1e-8
LEAKY_SLOPE = 0.01               # nn.LeakyReLU default


def _lrelu(z):
    # max(z, a*z) == LeakyReLU(z) for 0 < a < 1; avoids the compare of where().
    return jnp.maximum(z, LEAKY_SLOPE * z)


def bounce_kernel(x_ref,
                  w1_ref, b1_ref, w2_ref, b2_ref,
                  wd1_ref, bd1_ref, wd2_ref, bd2_ref,
                  out_ref):
    # Per-channel rows (feature-major): channels on sublanes, batch on lanes.
    vx = x_ref[0:1, :]
    vy = x_ref[1:2, :]
    vz = x_ref[2:3, :]
    wx = x_ref[3:4, :]
    wy = x_ref[4:5, :]
    wz = x_ref[5:6, :]

    # ---- gram_schmidth_2d: pure per-lane VPU math (no cross-lane reductions).
    # Exact divides: the approx reciprocal previously violated the tolerance.
    inv_vn = 1.0 / (jnp.sqrt(vx * vx + vy * vy) + EPS)
    v_on_x = vx * inv_vn                              # v_orthonormal
    v_on_y = vy * inv_vn

    proj = wx * v_on_x + wy * v_on_y
    w_ox = wx - proj * v_on_x                         # w_orthogonal
    w_oy = wy - proj * v_on_y
    inv_wn = 1.0 / (jnp.sqrt(w_ox * w_ox + w_oy * w_oy) + EPS)
    w_on_x = w_ox * inv_wn                            # w_orthonormal
    w_on_y = w_oy * inv_wn

    # det of R2d = [[v_on_x, w_on_x], [v_on_y, w_on_y]]; flip col 2 if det<0.
    det = v_on_x * w_on_y - w_on_x * v_on_y
    sign = jnp.where(det < 0, -1.0, 1.0)
    w_on_x = w_on_x * sign
    w_on_y = w_on_y * sign

    # Local-frame coordinates: RT2d @ vec.
    v_l0 = v_on_x * vx + v_on_y * vy
    v_l1 = w_on_x * vx + w_on_y * vy
    w_l0 = v_on_x * wx + v_on_y * wy
    w_l1 = w_on_x * wx + w_on_y * wy

    # MLP input; the /3 and /(60*pi) normalization is folded into w1.
    mlp_in = jnp.concatenate([v_l0, v_l1, vz, w_l0, w_l1, wz], axis=0)  # [6,T]

    # ---- MLP (feature-major: weights are [out, in], activations [out, T]).
    h1 = _lrelu(jnp.dot(w1_ref[...], mlp_in,
                        preferred_element_type=jnp.float32) + b1_ref[...])
    h2 = _lrelu(jnp.dot(w2_ref[...], h1,
                        preferred_element_type=jnp.float32) + b2_ref[...])
    xm = h1 + h2 * h1
    d = _lrelu(jnp.dot(wd1_ref[...], xm,
                       preferred_element_type=jnp.float32) + bd1_ref[...])
    out = jnp.dot(wd2_ref[...], d,
                  preferred_element_type=jnp.float32) + bd2_ref[...]    # [6,T]
    # The *3 / *(60*pi) un-normalization is folded into wd2/bd2.

    vl0, vl1, vz_new = out[0:1, :], out[1:2, :], out[2:3, :]
    wl0, wl1, wz_new = out[3:4, :], out[4:5, :], out[5:6, :]

    # Rotate back with R2d (col0 = v_on, col1 = corrected w_on) and store the
    # whole padded [8, T] block with a single unmasked full-tile store.
    zero = jnp.zeros_like(vz_new)
    out_ref[...] = jnp.concatenate([
        v_on_x * vl0 + w_on_x * vl1,
        v_on_y * vl0 + w_on_y * vl1,
        vz_new,
        v_on_x * wl0 + w_on_x * wl1,
        v_on_y * wl0 + w_on_y * wl1,
        wz_new,
        zero, zero,
    ], axis=0)


def fold_params(params):
    """Transpose to [out, in] and fold the constant scales into the weights."""
    w1, b1, w2, b2, wd1, bd1, wd2, bd2 = params
    scale = jnp.array([V_SCALE, V_SCALE, V_SCALE,
                       W_SCALE, W_SCALE, W_SCALE], jnp.float32)
    w1_k = (w1 / scale[:, None]).T            # [32, 6], input normalization folded
    b1_k = b1.reshape(HIDDEN, 1)
    w2_k = w2.T                               # [32, 32]
    b2_k = b2.reshape(HIDDEN, 1)
    wd1_k = wd1.T                             # [32, 32]
    bd1_k = bd1.reshape(HIDDEN, 1)
    wd2_k = (wd2 * scale[None, :]).T          # [6, 32], output un-normalization folded
    bd2_k = (bd2 * scale[None, :]).reshape(6, 1)
    return (w1_k, b1_k, w2_k, b2_k, wd1_k, bd1_k, wd2_k, bd2_k)


def _choose_tiling(n, tile_n):
    """Lane-tile size + #grid steps; bounds padding waste to <128 lanes/step."""
    lane_pad = int(pl.cdiv(n, 128) * 128)
    steps = int(pl.cdiv(lane_pad, tile_n))
    # v7x megacore: keep >=2 grid steps once there is enough work to split.
    if steps == 1 and lane_pad >= 4096:
        steps = 2
    tile = int(pl.cdiv(lane_pad, steps * 128) * 128)
    return tile, steps


def bounce_forward(v, w, params, *, tile_n=8192):
    n = v.shape[0]
    kparams = fold_params(params)

    tile, steps = _choose_tiling(n, tile_n)
    n_pad = tile * steps

    # feature-major [8, N]: 6 channels + 2 zero pad rows -> full (8,128) tiles.
    x = jnp.concatenate([v.T.astype(jnp.float32),
                         w.T.astype(jnp.float32),
                         jnp.zeros((2, n), jnp.float32)], axis=0)       # [8, N]
    if n_pad != n:
        x = jnp.pad(x, ((0, 0), (0, n_pad - n)))    # zero cols are harmless

    io_spec = pl.BlockSpec((8, tile), lambda i: (0, i))
    # weights/biases: full-array blocks, resident in VMEM across all tiles.
    w_specs = [pl.BlockSpec(p.shape, lambda i: (0, 0)) for p in kparams]

    out = pl.pallas_call(
        bounce_kernel,
        out_shape=jax.ShapeDtypeStruct((8, n_pad), jnp.float32),
        grid_spec=pltpu.PrefetchScalarGridSpec(
            num_scalar_prefetch=0,
            grid=(steps,),
            in_specs=[io_spec] + w_specs,
            out_specs=io_spec,
        ),
        compiler_params=pltpu.CompilerParams(
            dimension_semantics=("parallel",)),
    )(x, *kparams)

    v_new = out[0:3, :n].T
    w_new = out[3:6, :n].T
    return v_new, w_new


def init_params(key):
    """Raw (PyTorch-style) parameters: w as [in, out], b as [1, out]."""
    ks = jax.random.split(key, 8)

    def lin(kw, fan_in, fan_out):
        bound = 1.0 / math.sqrt(fan_in)
        return jax.random.uniform(kw, (fan_in, fan_out), jnp.float32,
                                  -bound, bound)

    w1 = lin(ks[0], 6, HIDDEN)
    b1 = jax.random.uniform(ks[1], (1, HIDDEN), jnp.float32, -0.4, 0.4)
    w2 = lin(ks[2], HIDDEN, HIDDEN)
    b2 = jax.random.uniform(ks[3], (1, HIDDEN), jnp.float32, -0.17, 0.17)
    wd1 = lin(ks[4], HIDDEN, HIDDEN)
    bd1 = jax.random.uniform(ks[5], (1, HIDDEN), jnp.float32, -0.17, 0.17)
    wd2 = lin(ks[6], HIDDEN, 6)
    bd2 = jax.random.uniform(ks[7], (1, 6), jnp.float32, -0.17, 0.17)
    return (w1, b1, w2, b2, wd1, bd1, wd2, bd2)


def reference_forward(v, w, params):
    """Pure-JAX reference (mirrors the PyTorch forward, unfolded scales)."""
    w1, b1, w2, b2, wd1, bd1, wd2, bd2 = params
    v2d, w2d = v[:, :2], w[:, :2]
    v_on = v2d / (jnp.linalg.norm(v2d, axis=-1, keepdims=True) + EPS)
    proj = jnp.sum(w2d * v_on, -1, keepdims=True) * v_on
    w_orth = w2d - proj
    w_on = w_orth / (jnp.linalg.norm(w_orth, axis=-1, keepdims=True) + EPS)
    det = v_on[:, 0:1] * w_on[:, 1:2] - w_on[:, 0:1] * v_on[:, 1:2]
    w_onc = jnp.where(det < 0, -w_on, w_on)
    v2d_l = jnp.stack([jnp.sum(v_on * v2d, -1), jnp.sum(w_onc * v2d, -1)], -1)
    w2d_l = jnp.stack([jnp.sum(v_on * w2d, -1), jnp.sum(w_onc * w2d, -1)], -1)
    x = jnp.concatenate([v2d_l / V_SCALE, v[:, 2:3] / V_SCALE,
                         w2d_l / W_SCALE, w[:, 2:3] / W_SCALE], -1)
    h1 = _lrelu(x @ w1 + b1)
    h2 = _lrelu(h1 @ w2 + b2)
    xm = h1 + h2 * h1
    d = _lrelu(xm @ wd1 + bd1)
    out = d @ wd2 + bd2
    vl, vz = out[:, :2] * V_SCALE, out[:, 2:3] * V_SCALE
    wl, wz = out[:, 3:5] * W_SCALE, out[:, 5:6] * W_SCALE
    v2d_new = v_on * vl[:, 0:1] + w_onc * vl[:, 1:2]
    w2d_new = v_on * wl[:, 0:1] + w_onc * wl[:, 1:2]
    return (jnp.concatenate([v2d_new, vz], -1),
            jnp.concatenate([w2d_new, wz], -1))


if __name__ == "__main__":
    key = jax.random.PRNGKey(0)
    kv, kw, kp = jax.random.split(key, 3)
    N = 8
    v = jax.random.normal(kv, (N, 3), jnp.float32)
    w = jax.random.normal(kw, (N, 3), jnp.float32)
    params = init_params(kp)

    v_new, w_new = bounce_forward(v, w, params)
    jax.block_until_ready((v_new, w_new))

    v_ref, w_ref = reference_forward(v, w, params)
    # Exact (non-approx) normalizations in the kernel -> agreement is ~1e-6;
    # tolerance kept loose only for f32 reassociation / scale-folding rounding.
    np.testing.assert_allclose(np.asarray(v_new), np.asarray(v_ref),
                               rtol=2e-3, atol=2e-3)
    np.testing.assert_allclose(np.asarray(w_new), np.asarray(w_ref),
                               rtol=2e-3, atol=2e-3)
    print("KERNEL_OK")
</pallas_src>

<mosaic_0001>
module attributes {stable_mosaic.version = 11 : i64} {
  func.func @bounce_kernel(%arg0: i32, %arg1: memref<8x128xf32, #tpu.memory_space<vmem>>, %arg2: memref<32x6xf32, #tpu.memory_space<vmem>>, %arg3: memref<32x1xf32, #tpu.memory_space<vmem>>, %arg4: memref<32x32xf32, #tpu.memory_space<vmem>>, %arg5: memref<32x1xf32, #tpu.memory_space<vmem>>, %arg6: memref<32x32xf32, #tpu.memory_space<vmem>>, %arg7: memref<32x1xf32, #tpu.memory_space<vmem>>, %arg8: memref<6x32xf32, #tpu.memory_space<vmem>>, %arg9: memref<6x1xf32, #tpu.memory_space<vmem>>, %arg10: memref<8x128xf32, #tpu.memory_space<vmem>>) attributes {dimension_semantics = [#tpu.dimension_semantics<parallel>], iteration_bounds = array<i64: 1>, scalar_prefetch = 0 : i64, scratch_operands = 0 : i64, tpu.core_type = #tpu.core_type<tc>, window_params = [{transform_indices = @transform_0, window_bounds = array<i64: 8, 128>}, {pipeline_mode = #tpu.pipeline_mode<synchronous>, transform_indices = @transform_1, window_bounds = array<i64: 32, 6>}, {pipeline_mode = #tpu.pipeline_mode<synchronous>, transform_indices = @transform_2, window_bounds = array<i64: 32, 1>}, {pipeline_mode = #tpu.pipeline_mode<synchronous>, transform_indices = @transform_3, window_bounds = array<i64: 32, 32>}, {pipeline_mode = #tpu.pipeline_mode<synchronous>, transform_indices = @transform_4, window_bounds = array<i64: 32, 1>}, {pipeline_mode = #tpu.pipeline_mode<synchronous>, transform_indices = @transform_5, window_bounds = array<i64: 32, 32>}, {pipeline_mode = #tpu.pipeline_mode<synchronous>, transform_indices = @transform_6, window_bounds = array<i64: 32, 1>}, {pipeline_mode = #tpu.pipeline_mode<synchronous>, transform_indices = @transform_7, window_bounds = array<i64: 6, 32>}, {pipeline_mode = #tpu.pipeline_mode<synchronous>, transform_indices = @transform_8, window_bounds = array<i64: 6, 1>}, {transform_indices = @transform_9, window_bounds = array<i64: 8, 128>}]} {
    %c0 = arith.constant 0 : index
    %c0_0 = arith.constant 0 : index
    %0 = vector.load %arg1[%c0, %c0_0] : memref<8x128xf32, #tpu.memory_space<vmem>>, vector<1x128xf32>
    %c1 = arith.constant 1 : index
    %c0_1 = arith.constant 0 : index
    %1 = vector.load %arg1[%c1, %c0_1] : memref<8x128xf32, #tpu.memory_space<vmem>>, vector<1x128xf32>
    %c2 = arith.constant 2 : index
    %c0_2 = arith.constant 0 : index
    %2 = vector.load %arg1[%c2, %c0_2] : memref<8x128xf32, #tpu.memory_space<vmem>>, vector<1x128xf32>
    %c3 = arith.constant 3 : index
    %c0_3 = arith.constant 0 : index
    %3 = vector.load %arg1[%c3, %c0_3] : memref<8x128xf32, #tpu.memory_space<vmem>>, vector<1x128xf32>
    %c4 = arith.constant 4 : index
    %c0_4 = arith.constant 0 : index
    %4 = vector.load %arg1[%c4, %c0_4] : memref<8x128xf32, #tpu.memory_space<vmem>>, vector<1x128xf32>
    %c5 = arith.constant 5 : index
    %c0_5 = arith.constant 0 : index
    %5 = vector.load %arg1[%c5, %c0_5] : memref<8x128xf32, #tpu.memory_space<vmem>>, vector<1x128xf32>
    %6 = arith.mulf %0, %0 : vector<1x128xf32>
    %7 = arith.mulf %1, %1 : vector<1x128xf32>
    %8 = arith.addf %6, %7 : vector<1x128xf32>
    %9 = math.sqrt %8 : vector<1x128xf32>
    %cst = arith.constant 9.99999993E-9 : f32
    %10 = vector.broadcast %cst : f32 to vector<1x128xf32>
    %11 = arith.addf %9, %10 : vector<1x128xf32>
    %cst_6 = arith.constant 1.000000e+00 : f32
    %12 = vector.broadcast %cst_6 : f32 to vector<1x128xf32>
    %13 = arith.divf %12, %11 : vector<1x128xf32>
    %14 = arith.mulf %0, %13 : vector<1x128xf32>
    %15 = arith.mulf %1, %13 : vector<1x128xf32>
    %16 = arith.mulf %3, %14 : vector<1x128xf32>
    %17 = arith.mulf %4, %15 : vector<1x128xf32>
    %18 = arith.addf %16, %17 : vector<1x128xf32>
    %19 = arith.mulf %18, %14 : vector<1x128xf32>
    %20 = arith.subf %3, %19 : vector<1x128xf32>
    %21 = arith.mulf %18, %15 : vector<1x128xf32>
    %22 = arith.subf %4, %21 : vector<1x128xf32>
    %23 = arith.mulf %20, %20 : vector<1x128xf32>
    %24 = arith.mulf %22, %22 : vector<1x128xf32>
    %25 = arith.addf %23, %24 : vector<1x128xf32>
    %26 = math.sqrt %25 : vector<1x128xf32>
    %cst_7 = arith.constant 9.99999993E-9 : f32
    %27 = vector.broadcast %cst_7 : f32 to vector<1x128xf32>
    %28 = arith.addf %26, %27 : vector<1x128xf32>
    %cst_8 = arith.constant 1.000000e+00 : f32
    %29 = vector.broadcast %cst_8 : f32 to vector<1x128xf32>
    %30 = arith.divf %29, %28 : vector<1x128xf32>
    %31 = arith.mulf %20, %30 : vector<1x128xf32>
    %32 = arith.mulf %22, %30 : vector<1x128xf32>
    %33 = arith.mulf %14, %32 : vector<1x128xf32>
    %34 = arith.mulf %31, %15 : vector<1x128xf32>
    %35 = arith.subf %33, %34 : vector<1x128xf32>
    %cst_9 = arith.constant 0.000000e+00 : f32
    %36 = vector.broadcast %cst_9 : f32 to vector<1x128xf32>
    %37 = arith.cmpf olt, %35, %36 : vector<1x128xf32>
    %cst_10 = arith.constant -1.000000e+00 : f32
    %cst_11 = arith.constant 1.000000e+00 : f32
    %38 = vector.broadcast %cst_10 : f32 to vector<1x128xf32>
    %39 = vector.broadcast %cst_11 : f32 to vector<1x128xf32>
    %40 = arith.select %37, %38, %39 : vector<1x128xi1>, vector<1x128xf32>
    %41 = arith.mulf %31, %40 : vector<1x128xf32>
    %42 = arith.mulf %32, %40 : vector<1x128xf32>
    %43 = arith.mulf %14, %0 : vector<1x128xf32>
    %44 = arith.mulf %15, %1 : vector<1x128xf32>
    %45 = arith.addf %43, %44 : vector<1x128xf32>
    %46 = arith.mulf %41, %0 : vector<1x128xf32>
    %47 = arith.mulf %42, %1 : vector<1x128xf32>
    %48 = arith.addf %46, %47 : vector<1x128xf32>
    %49 = arith.mulf %14, %3 : vector<1x128xf32>
    %50 = arith.mulf %15, %4 : vector<1x128xf32>
    %51 = arith.addf %49, %50 : vector<1x128xf32>
    %52 = arith.mulf %41, %3 : vector<1x128xf32>
    %53 = arith.mulf %42, %4 : vector<1x128xf32>
    %54 = arith.addf %52, %53 : vector<1x128xf32>
    %55 = tpu.concatenate %45, %48, %2, %51, %54, %5 in 0 : vector<1x128xf32>, vector<1x128xf32>, vector<1x128xf32>, vector<1x128xf32>, vector<1x128xf32>, vector<1x128xf32> -> vector<6x128xf32>
    %c0_12 = arith.constant 0 : index
    %c0_13 = arith.constant 0 : index
    %56 = vector.load %arg2[%c0_12, %c0_13] : memref<32x6xf32, #tpu.memory_space<vmem>>, vector<32x6xf32>
    %cst_14 = arith.constant dense<0.000000e+00> : vector<32x128xf32>
    %57 = tpu.matmul %56, %55, %cst_14 {dimension_numbers = #tpu.dot_dimension_numbers<[1], [0], [0], [1], [0, 0, 1, 1], [], []>} : vector<32x6xf32>, vector<6x128xf32>, vector<32x128xf32> -> vector<32x128xf32>
    %c0_15 = arith.constant 0 : index
    %c0_16 = arith.constant 0 : index
    %58 = vector.load %arg3[%c0_15, %c0_16] : memref<32x1xf32, #tpu.memory_space<vmem>>, vector<32x1xf32>
    %59 = vector.broadcast %58 : vector<32x1xf32> to vector<32x128xf32>
    %60 = arith.addf %57, %59 : vector<32x128xf32>
    %cst_17 = arith.constant 0.00999999977 : f32
    %61 = vector.broadcast %cst_17 : f32 to vector<32x128xf32>
    %62 = arith.mulf %61, %60 : vector<32x128xf32>
    %63 = arith.maximumf %60, %62 : vector<32x128xf32>
    %c0_18 = arith.constant 0 : index
    %c0_19 = arith.constant 0 : index
    %64 = vector.load %arg4[%c0_18, %c0_19] : memref<32x32xf32, #tpu.memory_space<vmem>>, vector<32x32xf32>
    %cst_20 = arith.constant dense<0.000000e+00> : vector<32x128xf32>
    %65 = tpu.matmul %64, %63, %cst_20 {dimension_numbers = #tpu.dot_dimension_numbers<[1], [0], [0], [1], [0, 0, 1, 1], [], []>} : vector<32x32xf32>, vector<32x128xf32>, vector<32x128xf32> -> vector<32x128xf32>
    %c0_21 = arith.constant 0 : index
    %c0_22 = arith.constant 0 : index
    %66 = vector.load %arg5[%c0_21, %c0_22] : memref<32x1xf32, #tpu.memory_space<vmem>>, vector<32x1xf32>
    %67 = vector.broadcast %66 : vector<32x1xf32> to vector<32x128xf32>
    %68 = arith.addf %65, %67 : vector<32x128xf32>
    %cst_23 = arith.constant 0.00999999977 : f32
    %69 = vector.broadcast %cst_23 : f32 to vector<32x128xf32>
    %70 = arith.mulf %69, %68 : vector<32x128xf32>
    %71 = arith.maximumf %68, %70 : vector<32x128xf32>
    %72 = arith.mulf %71, %63 : vector<32x128xf32>
    %73 = arith.addf %63, %72 : vector<32x128xf32>
    %c0_24 = arith.constant 0 : index
    %c0_25 = arith.constant 0 : index
    %74 = vector.load %arg6[%c0_24, %c0_25] : memref<32x32xf32, #tpu.memory_space<vmem>>, vector<32x32xf32>
    %cst_26 = arith.constant dense<0.000000e+00> : vector<32x128xf32>
    %75 = tpu.matmul %74, %73, %cst_26 {dimension_numbers = #tpu.dot_dimension_numbers<[1], [0], [0], [1], [0, 0, 1, 1], [], []>} : vector<32x32xf32>, vector<32x128xf32>, vector<32x128xf32> -> vector<32x128xf32>
    %c0_27 = arith.constant 0 : index
    %c0_28 = arith.constant 0 : index
    %76 = vector.load %arg7[%c0_27, %c0_28] : memref<32x1xf32, #tpu.memory_space<vmem>>, vector<32x1xf32>
    %77 = vector.broadcast %76 : vector<32x1xf32> to vector<32x128xf32>
    %78 = arith.addf %75, %77 : vector<32x128xf32>
    %cst_29 = arith.constant 0.00999999977 : f32
    %79 = vector.broadcast %cst_29 : f32 to vector<32x128xf32>
    %80 = arith.mulf %79, %78 : vector<32x128xf32>
    %81 = arith.maximumf %78, %80 : vector<32x128xf32>
    %c0_30 = arith.constant 0 : index
    %c0_31 = arith.constant 0 : index
    %82 = vector.load %arg8[%c0_30, %c0_31] : memref<6x32xf32, #tpu.memory_space<vmem>>, vector<6x32xf32>
    %cst_32 = arith.constant dense<0.000000e+00> : vector<6x128xf32>
    %83 = tpu.matmul %82, %81, %cst_32 {dimension_numbers = #tpu.dot_dimension_numbers<[1], [0], [0], [1], [0, 0, 1, 1], [], []>} : vector<6x32xf32>, vector<32x128xf32>, vector<6x128xf32> -> vector<6x128xf32>
    %c0_33 = arith.constant 0 : index
    %c0_34 = arith.constant 0 : index
    %84 = vector.load %arg9[%c0_33, %c0_34] : memref<6x1xf32, #tpu.memory_space<vmem>>, vector<6x1xf32>
    %85 = vector.broadcast %84 : vector<6x1xf32> to vector<6x128xf32>
    %86 = arith.addf %83, %85 : vector<6x128xf32>
    %87 = vector.extract_strided_slice %86 {offsets = [0, 0], sizes = [1, 128], strides = [1, 1]} : vector<6x128xf32> to vector<1x128xf32>
    %88 = vector.extract_strided_slice %86 {offsets = [1, 0], sizes = [1, 128], strides = [1, 1]} : vector<6x128xf32> to vector<1x128xf32>
    %89 = vector.extract_strided_slice %86 {offsets = [2, 0], sizes = [1, 128], strides = [1, 1]} : vector<6x128xf32> to vector<1x128xf32>
    %90 = vector.extract_strided_slice %86 {offsets = [3, 0], sizes = [1, 128], strides = [1, 1]} : vector<6x128xf32> to vector<1x128xf32>
    %91 = vector.extract_strided_slice %86 {offsets = [4, 0], sizes = [1, 128], strides = [1, 1]} : vector<6x128xf32> to vector<1x128xf32>
    %92 = vector.extract_strided_slice %86 {offsets = [5, 0], sizes = [1, 128], strides = [1, 1]} : vector<6x128xf32> to vector<1x128xf32>
    %cst_35 = arith.constant 0.000000e+00 : f32
    %93 = vector.broadcast %cst_35 : f32 to vector<1x128xf32>
    %94 = arith.mulf %14, %87 : vector<1x128xf32>
    %95 = arith.mulf %41, %88 : vector<1x128xf32>
    %96 = arith.addf %94, %95 : vector<1x128xf32>
    %97 = arith.mulf %15, %87 : vector<1x128xf32>
    %98 = arith.mulf %42, %88 : vector<1x128xf32>
    %99 = arith.addf %97, %98 : vector<1x128xf32>
    %100 = arith.mulf %14, %90 : vector<1x128xf32>
    %101 = arith.mulf %41, %91 : vector<1x128xf32>
    %102 = arith.addf %100, %101 : vector<1x128xf32>
    %103 = arith.mulf %15, %90 : vector<1x128xf32>
    %104 = arith.mulf %42, %91 : vector<1x128xf32>
    %105 = arith.addf %103, %104 : vector<1x128xf32>
    %106 = tpu.concatenate %96, %99, %89, %102, %105, %92, %93, %93 in 0 : vector<1x128xf32>, vector<1x128xf32>, vector<1x128xf32>, vector<1x128xf32>, vector<1x128xf32>, vector<1x128xf32>, vector<1x128xf32>, vector<1x128xf32> -> vector<8x128xf32>
    %c0_36 = arith.constant 0 : index
    %c0_37 = arith.constant 0 : index
    %107 = vector.load %arg10[%c0_36, %c0_37] : memref<8x128xf32, #tpu.memory_space<vmem>>, vector<8x128xf32>
    tpu.vector_store %arg10[%c0_36, %c0_37], %106 {strides = array<i32>} : memref<8x128xf32, #tpu.memory_space<vmem>>, vector<8x128xf32>,
    return
  }
  func.func @transform_0(%arg0: i32) -> (i32, i32) {
    %c0_i32 = arith.constant 0 : i32
    %c0_i32_0 = arith.constant 0 : i32
    return %c0_i32, %arg0 : i32, i32
  }
  func.func @transform_1(%arg0: i32) -> (i32, i32) {
    %c0_i32 = arith.constant 0 : i32
    %c0_i32_0 = arith.constant 0 : i32
    %c0_i32_1 = arith.constant 0 : i32
    return %c0_i32, %c0_i32_0 : i32, i32
  }
  func.func @transform_2(%arg0: i32) -> (i32, i32) {
    %c0_i32 = arith.constant 0 : i32
    %c0_i32_0 = arith.constant 0 : i32
    %c0_i32_1 = arith.constant 0 : i32
    return %c0_i32, %c0_i32_0 : i32, i32
  }
  func.func @transform_3(%arg0: i32) -> (i32, i32) {
    %c0_i32 = arith.constant 0 : i32
    %c0_i32_0 = arith.constant 0 : i32
    %c0_i32_1 = arith.constant 0 : i32
    return %c0_i32, %c0_i32_0 : i32, i32
  }
  func.func @transform_4(%arg0: i32) -> (i32, i32) {
    %c0_i32 = arith.constant 0 : i32
    %c0_i32_0 = arith.constant 0 : i32
    %c0_i32_1 = arith.constant 0 : i32
    return %c0_i32, %c0_i32_0 : i32, i32
  }
  func.func @transform_5(%arg0: i32) -> (i32, i32) {
    %c0_i32 = arith.constant 0 : i32
    %c0_i32_0 = arith.constant 0 : i32
    %c0_i32_1 = arith.constant 0 : i32
    return %c0_i32, %c0_i32_0 : i32, i32
  }
  func.func @transform_6(%arg0: i32) -> (i32, i32) {
    %c0_i32 = arith.constant 0 : i32
    %c0_i32_0 = arith.constant 0 : i32
    %c0_i32_1 = arith.constant 0 : i32
    return %c0_i32, %c0_i32_0 : i32, i32
  }
  func.func @transform_7(%arg0: i32) -> (i32, i32) {
    %c0_i32 = arith.constant 0 : i32
    %c0_i32_0 = arith.constant 0 : i32
    %c0_i32_1 = arith.constant 0 : i32
    return %c0_i32, %c0_i32_0 : i32, i32
  }
  func.func @transform_8(%arg0: i32) -> (i32, i32) {
    %c0_i32 = arith.constant 0 : i32
    %c0_i32_0 = arith.constant 0 : i32
    %c0_i32_1 = arith.constant 0 : i32
    return %c0_i32, %c0_i32_0 : i32, i32
  }
  func.func @transform_9(%arg0: i32) -> (i32, i32) {
    %c0_i32 = arith.constant 0 : i32
    %c0_i32_0 = arith.constant 0 : i32
    return %c0_i32, %arg0 : i32, i32
  }
}

</mosaic_0001>

<bundles_post_ra>
// kernel: tpu_custom_call.1
= control target key start
LH: loop header
LB: loop body
LE: loop exit
PB: predicated region body
PF: predicated region fallthrough
CT: control target
= control target key end

     0   :  { %vm145_vm0 = vcmask 48128   ;;  %v810_v8 = vmov 0   ;;  %s1042_s0 = inlined_call_operand.vmem [shape: f32[8,128], index: 0, kind: input, shape index: {}]   ;;  %s1043_s1 = inlined_call_operand.vmem [shape: f32[32,6], index: 1, kind: input, shape index: {}]   ;;  %s1044_s2 = inlined_call_operand.vmem [shape: f32[32,1], index: 2, kind: input, shape index: {}]   ;;  %s1045_s3 = inlined_call_operand.vmem [shape: f32[32,32], index: 3, kind: input, shape index: {}]   ;;  %s1046_s4 = inlined_call_operand.vmem [shape: f32[32,1], index: 4, kind: input, shape index: {}]   ;;  %s1047_s5 = inlined_call_operand.vmem [shape: f32[32,32], index: 5, kind: input, shape index: {}]   ;;  %s1048_s6 = inlined_call_operand.vmem [shape: f32[32,1], index: 6, kind: input, shape index: {}]   ;;  %s1049_s7 = inlined_call_operand.vmem [shape: f32[6,32], index: 7, kind: input, shape index: {}]   ;;  %s1050_s8 = inlined_call_operand.vmem [shape: f32[6,1], index: 8, kind: input, shape index: {}]   ;;  %s1051_s9 = inlined_call_operand.hbm [shape: f32[8,128], index: 9, kind: output, shape index: {}]  }
   0x1   :  { %v869_v0 = vld [vmem:[%s1042_s0] sm:$0x1]  ;;  %v874_v1 = vld [vmem:[%s1042_s0 + $0x1] sm:$0x1]  ;;  %v123_v7 = vld [vmem:[%s1044_s2 + $0x10] sm:$0xff]  ;;  %776 = vset.pattern.permute.xlu0 %v810_v8  ;;  %777 = vset.pattern.permute.xlu1 %v810_v8 }
   0x2   :  { %v39_v2 = vmul.f32 %v869_v0, %v869_v0  ;;  %v40_v3 = vmul.f32 %v874_v1, %v874_v1  ;;  %v117_v4 = vld [vmem:[%s1043_s1] sm:$0xff]  ;;  %v122_v9 = vld [vmem:[%s1044_s2 + $0x8] sm:$0xff]  ;;  %137 = vperm.xlu1 %777, %v123_v7   ;;  %v124_v10 = vld [vmem:[%s1044_s2 + $0x18] sm:$0xff] }
   0x3   :  { %v121_v6 = vld [vmem:[%s1044_s2] sm:$0xff]  ;;  %703 = vmatprep.mubr.msk.f32.mxu0 %vm145_vm0, %v117_v4 }
   0x4   :  { %v41_v5 = vadd.f32 %v40_v3, %v39_v2  ;;  %127 = vperm.xlu0 %776, %v121_v6  }
   0x6   :  { %778 = vrsqrt.f32 %v41_v5 }
   0x7   :  { %14 = vsyncpa [#allocation3], 0  ;;  %v259_v11 = vld [vmem:[%s1046_s4] sm:$0xff]  ;;  %142 = vperm.xlu1 %777, %v124_v10   ;;  %v260_v12 = vld [vmem:[%s1046_s4 + $0x8] sm:$0xff]  ;;  %vm44_vm1 = vcmp.eq.f32.partialorder %v41_v5, inf  ;;  %v47_v14 = vand.u32 2147483648, %v41_v5 }
   0x8   :  { %132 = vperm.xlu0 %776, %v122_v9   ;;  %v261_v15 = vld [vmem:[%s1046_s4 + $0x10] sm:$0xff]  ;;  %vm46_vm2 = vcmp.eq.f32.partialorder %v41_v5, 0.0  ;;  %v262_v17 = vld [vmem:[%s1046_s4 + $0x18] sm:$0xff]  ;;  %v401_v20 = vld [vmem:[%s1048_s6] sm:$0xff]  ;;  %v811_v53 = vmov 1.0   ;;  %vm107_vm6 = vcmask 1040384  }
   0x9   :  { %v402_v22 = vld [vmem:[%s1048_s6 + $0x8] sm:$0xff]  ;;  %v403_v23 = vld [vmem:[%s1048_s6 + $0x10] sm:$0xff]  ;;  %v404_v24 = vld [vmem:[%s1048_s6 + $0x18] sm:$0xff]  ;;  %vm109_vm7 = vcmask 1041408   ;;  %vm111_vm8 = vcmask 1042432   ;;  %vm113_vm9 = vcmask 1043456  }
   0xa   :  { %v531_v25 = vld [vmem:[%s1050_s8] sm:$0x3f]  ;;  %vm115_vm10 = vcmask 1044480   ;;  %vm158_vm11 = vcmask 1045504   ;;  %vm283_vm12 = vcmask 261120   ;;  %vm813_vm13 = vmmov 0  }
   0xb   :  { %270 = vperm.xlu1 %777, %v260_v12   ;;  %v36_v27 = vld [vmem:[%s1042_s0 + $0x3] sm:$0x1]  ;;  %v37_v28 = vld [vmem:[%s1042_s0 + $0x4] sm:$0x1]  ;;  %v35_v59 = vld [vmem:[%s1042_s0 + $0x2] sm:$0x1] }
   0xc   :  { %265 = vperm.xlu0 %776, %v259_v11   ;;  %v96_v6 = vrot.slane %v35_v59, 6  ;;  %vm644_vm14 = vcmask 1046528  }
   0xf   :  { %280 = vperm.xlu1 %777, %v262_v17   ;;  %v255_v17 = vld [vmem:[%s1045_s3] sm:$0xff] }
  0x10   :  { %v779_v13 = vpop.eup %778  ;;  %275 = vperm.xlu0 %776, %v261_v15   ;;  %v119_v15 = vld [vmem:[%s1043_s1 + $0x10] sm:$0xff]  ;;  %717 = vmatprep.mubr.msk.f32.mxu1 %vm283_vm12, %v255_v17  ;;  %v812_v17 = vmov 0.0|0.0  }
  0x11   :  { %v43_v16 = vmul.f32 %v779_v13, %v41_v5 }
  0x13   :  { %v45_v18 = vsel %vm44_vm1, %v41_v5, %v43_v16  ;;  %412 = vperm.xlu1 %777, %v402_v22   ;;  %v38_v5 = vld [vmem:[%s1042_s0 + $0x5] sm:$0x1]  ;;  %v120_v16 = vld [vmem:[%s1043_s1 + $0x18] sm:$0xff] }
  0x14   :  { %v48_v19 = vsel %vm46_vm2, %v47_v14, %v45_v18  ;;  %407 = vperm.xlu0 %776, %v401_v20   ;;  %v105_v9 = vrot.slane %v38_v5, 3  ;;  %v118_v14 = vld [vmem:[%s1043_s1 + $0x8] sm:$0xff] }
  0x15   :  { %v49_v21 = vadd.f32 1e-08, %v48_v19 }
  0x17   :  { %780 = vrcp.f32 %v49_v21  ;;  %422 = vperm.xlu1 %777, %v404_v24  }
  0x18   :  { %417 = vperm.xlu0 %776, %v403_v23  }
  0x1c   :  { %534 = vperm.xlu0 %776, %v531_v25  }
  0x21   :  { %v781_v26 = vpop.eup %780 }
  0x22   :  { %v930_v29 = vmul.f32 %v781_v26, %v869_v0  ;;  %v933_v30 = vmul.f32 %v781_v26, %v874_v1 }
  0x24   :  { %v54_v31 = vmul.f32 %v930_v29, %v36_v27  ;;  %v55_v32 = vmul.f32 %v933_v30, %v37_v28  ;;  %v83_v57 = vmul.f32 %v930_v29, %v869_v0  ;;  %v84_v58 = vmul.f32 %v933_v30, %v874_v1 }
  0x26   :  { %v56_v33 = vadd.f32 %v55_v32, %v54_v31  ;;  %v85_v2 = vadd.f32 %v84_v58, %v83_v57 }
  0x28   :  { %v57_v34 = vmul.f32 %v56_v33, %v930_v29  ;;  %v59_v35 = vmul.f32 %v56_v33, %v933_v30  ;;  %v99_v8 = vrot.slane %v56_v33, 5 }
  0x2a   :  { %v58_v36 = vsub.f32 %v36_v27, %v57_v34  ;;  %v60_v37 = vsub.f32 %v37_v28, %v59_v35 }
  0x2c   :  { %v61_v38 = vmul.f32 %v58_v36, %v58_v36  ;;  %v62_v39 = vmul.f32 %v60_v37, %v60_v37 }
  0x2e   :  { %v63_v40 = vadd.f32 %v62_v39, %v61_v38 }
  0x30   :  { %782 = vrsqrt.f32 %v63_v40  ;;  %vm66_vm3 = vcmp.eq.f32.partialorder %v63_v40, inf  ;;  %v69_v42 = vand.u32 2147483648, %v63_v40  ;;  %vm68_vm4 = vcmp.eq.f32.partialorder %v63_v40, 0.0 }
  0x3a   :  { %v783_v41 = vpop.eup %782 }
  0x3b   :  { %v65_v43 = vmul.f32 %v783_v41, %v63_v40 }
  0x3d   :  { %v67_v44 = vsel %vm66_vm3, %v63_v40, %v65_v43  ;;  %v257_v43 = vld [vmem:[%s1045_s3 + $0x10] sm:$0xff] }
  0x3e   :  { %v70_v45 = vsel %vm68_vm4, %v69_v42, %v67_v44  ;;  %v256_v42 = vld [vmem:[%s1045_s3 + $0x8] sm:$0xff]  ;;  %v258_v44 = vld [vmem:[%s1045_s3 + $0x18] sm:$0xff] }
  0x3f   :  { %v71_v46 = vadd.f32 1e-08, %v70_v45  ;;  %v397_v45 = vld [vmem:[%s1047_s5] sm:$0xff] }
  0x41   :  { %784 = vrcp.f32 %v71_v46 }
  0x4b   :  { %v785_v47 = vpop.eup %784 }
  0x4c   :  { %v74_v48 = vmul.f32 %v785_v47, %v58_v36  ;;  %v75_v49 = vmul.f32 %v785_v47, %v60_v37 }
  0x4e   :  { %v76_v50 = vmul.f32 %v75_v49, %v930_v29  ;;  %v77_v51 = vmul.f32 %v74_v48, %v933_v30 }
  0x50   :  { %v78_v52 = vsub.f32 %v76_v50, %v77_v51 }
  0x52   :  { %vm79_vm5 = vcmp.lt.f32.partialorder %v78_v52, 0.0 }
  0x53   :  { %v80_v54 = vsel %vm79_vm5, -1.0, %v811_v53 }
  0x54   :  { %v941_v55 = vmul.f32 %v80_v54, %v74_v48  ;;  %v943_v56 = vmul.f32 %v80_v54, %v75_v49 }
  0x56   :  { %v86_v60 = vmul.f32 %v941_v55, %v869_v0  ;;  %v87_v61 = vmul.f32 %v943_v56, %v874_v1  ;;  %v89_v62 = vmul.f32 %v941_v55, %v36_v27  ;;  %v90_v63 = vmul.f32 %v943_v56, %v37_v28 }
  0x58   :  { %v88_v3 = vadd.f32 %v87_v61, %v86_v60  ;;  %v91_v4 = vadd.f32 %v90_v63, %v89_v62 }
  0x5a   :  { %v93_v7 = vrot.slane %v88_v3, 7  ;;  %v102_v0 = vrot.slane %v91_v4, 4 }
  0x5c   :  { %v108_v1 = vsel %vm107_vm6, %v85_v2, %v93_v7 }
  0x5d   :  { %v110_v10 = vsel %vm109_vm7, %v108_v1, %v96_v6 }
  0x5e   :  { %v112_v11 = vsel %vm111_vm8, %v110_v10, %v99_v8 }
  0x5f   :  { %v114_v12 = vsel %vm113_vm9, %v112_v11, %v102_v0 }
  0x60   :  { %v116_v13 = vsel %vm115_vm10, %v114_v12, %v105_v9 }
  0x61   :  { %701 = vmatprep.subr.msk.mxu0 %vm158_vm11, %v116_v13 }
  0x62   :  { %702 = vmatpush3.msk.msra.mxu0 %vm158_vm11, %v116_v13 }
  0x63   :  { %704 = vmatmul.mubr.msk.f32.vlgmr.msra.gmra.mrb[0].mxu0 %vm145_vm0, %v118_v14  ;;  %v398_v14 = vld [vmem:[%s1047_s5 + $0x8] sm:$0xff] }
  0x64   :  { %706 = vmatprep.mubr.msk.f32.mxu0 %vm145_vm0, %v119_v15  ;;  %v399_v15 = vld [vmem:[%s1047_s5 + $0x10] sm:$0xff] }
  0x67   :  { %707 = vmatmul.mubr.msk.f32.gmra.mrb[2].mxu0 %vm145_vm0, %v120_v16  ;;  %v400_v16 = vld [vmem:[%s1047_s5 + $0x18] sm:$0xff] }
  0x68   :  { %731 = vmatprep.mubr.msk.f32.mxu0 %vm283_vm12, %v397_v45 }
  0x81   :  { %v138_v19 = vpop.permute.xlu1 %137 }
  0x83   :  { %v128_v18 = vpop.permute.xlu0 %127 }
  0x86   :  { %v143_v26 = vpop.permute.xlu1 %142 }
  0x87   :  { %v133_v20 = vpop.permute.xlu0 %132 }
  0x8a   :  { %v271_v46 = vpop.permute.xlu1 %270 }
  0x8b   :  { %v266_v47 = vpop.permute.xlu0 %265 }
  0x8e   :  { %v281_v53 = vpop.permute.xlu1 %280 }
  0x8f   :  { %v276_v58 = vpop.permute.xlu0 %275 }
 0x136   :  { %v705_v21 = vpop.f32.mrb[0].mxu0 }
 0x137   :  { %v234_v22 = vadd.f32 %v705_v21, %v133_v20  ;;  %v228_v23 = vpop.f32.mrb[1].mxu0  ;;  %v408_v20 = vpop.permute.xlu0 %407 }
 0x138   :  { %v229_v24 = vadd.f32 %v228_v23, %v128_v18  ;;  %v814_v18 = vmov 0.0  }
 0x139   :  { %v248_v25 = vmul.f32 0.01, %v234_v22 }
 0x13a   :  { %v247_v27 = vmul.f32 0.01, %v229_v24  ;;  %v708_v28 = vpop.f32.mrb[2].mxu0 }
 0x13b   :  { %v252_v31 = vmax.f32 %v234_v22, %v248_v25  ;;  %v244_v32 = vadd.f32 %v708_v28, %v143_v26  ;;  %v238_v33 = vpop.f32.mrb[3].mxu0 }
 0x13c   :  { %v251_v34 = vmax.f32 %v229_v24, %v247_v27  ;;  %v239_v35 = vadd.f32 %v238_v33, %v138_v19  ;;  %v413_v19 = vpop.permute.xlu1 %412 }
 0x13d   :  { %v250_v36 = vmul.f32 0.01, %v244_v32 }
 0x13e   :  { %v249_v37 = vmul.f32 0.01, %v239_v35  ;;  %v748_v38 = vpack.c.bf16 %v252_v31, %v251_v34 }
 0x13f   :  { %v254_v39 = vmax.f32 %v244_v32, %v250_v36 }
 0x140   :  { %v253_v40 = vmax.f32 %v239_v35, %v249_v37  ;;  %749 = vmatprep.subr.bf16.mxu1 %v748_v38  ;;  %v423_v26 = vpop.permute.xlu1 %422 }
 0x141   :  { %751 = vmatpush3.bf16.msra.mxu1 %v748_v38 }
 0x142   :  { %v752_v41 = vpack.c.bf16 %v254_v39, %v253_v40 }
 0x144   :  { %753 = vmatprep.subr.bf16.mxu1 %v752_v41 }
 0x145   :  { %755 = vmatpush3.bf16.msra.mxu1 %v752_v41 }
 0x146   :  { %764 = vmatprep.subr.bf16.mxu1 %v812_v17 }
 0x148   :  { %718 = vmatmul.mubr.msk.f32.vlgmr.msra.gmra.mrb[0].mxu1 %vm283_vm12, %v256_v42 }
 0x149   :  { %720 = vmatprep.mubr.msk.f32.mxu1 %vm283_vm12, %v257_v43  ;;  %v530_v43 = vld [vmem:[%s1049_s7] sm:$0x3f]  ;;  %s815_s7 = smov [#allocation2]  }
 0x14a   :  { %s653_s21 = sshll.u32 %s815_s7, 4  ;;  %s654_s21 = int_to_ptr.vmem [resolvable:$true] %s653_s21 }
 0x14b   :  { %s786_s6 = scalar_lea.vmem %s654_s21, 128  ;;  %p791_p1 = scmp.lt.s32.totalorder %s654_s21, %s654_s21 }
 0x14c   :  { %721 = vmatmul.mubr.msk.f32.gmra.mrb[2].mxu1 %vm283_vm12, %v258_v44  ;;  %p787_p0 = scmp.ne.s32.totalorder %s654_s21, %s786_s6  ;;  %p792_p2 = scmp.lt.s32.totalorder %s786_s6, %s786_s6 }
 0x14d   :  { %745 = vmatprep.mubr.msk.f32.mxu1 %vm813_vm13, %v814_v18 }
 0x14e   :  { %p793_p3 = por %p792_p2, %p791_p1 }
 0x150   :  { %p794_p4 = pnand %p793_p3, %p787_p0 }
 0x21b   :  { %v719_v48 = vpop.f32.mrb[0].mxu1 }
 0x21c   :  { %v368_v49 = vadd.f32 %v719_v48, %v271_v46  ;;  %v362_v50 = vpop.f32.mrb[1].mxu1 }
 0x21d   :  { %v363_v51 = vadd.f32 %v362_v50, %v266_v47 }
 0x21e   :  { %v382_v52 = vmul.f32 0.01, %v368_v49 }
 0x21f   :  { %v381_v54 = vmul.f32 0.01, %v363_v51  ;;  %v722_v57 = vpop.f32.mrb[2].mxu1 }
 0x220   :  { %v386_v59 = vmax.f32 %v368_v49, %v382_v52  ;;  %v378_v60 = vadd.f32 %v722_v57, %v281_v53  ;;  %v372_v61 = vpop.f32.mrb[3].mxu1 }
 0x221   :  { %v385_v62 = vmax.f32 %v363_v51, %v381_v54  ;;  %v373_v63 = vadd.f32 %v372_v61, %v276_v58 }
 0x222   :  { %v390_v2 = vmul.f32 %v386_v59, %v252_v31  ;;  %v384_v3 = vmul.f32 0.01, %v378_v60 }
 0x223   :  { %v389_v4 = vmul.f32 %v385_v62, %v251_v34  ;;  %v383_v5 = vmul.f32 0.01, %v373_v63 }
 0x224   :  { %v388_v6 = vmax.f32 %v378_v60, %v384_v3  ;;  %v394_v7 = vadd.f32 %v390_v2, %v252_v31  ;;  %v418_v31 = vpop.permute.xlu0 %417 }
 0x225   :  { %v387_v8 = vmax.f32 %v373_v63, %v383_v5  ;;  %v393_v0 = vadd.f32 %v389_v4, %v251_v34 }
 0x226   :  { %v392_v9 = vmul.f32 %v388_v6, %v254_v39 }
 0x227   :  { %v391_v1 = vmul.f32 %v387_v8, %v253_v40  ;;  %v756_v10 = vpack.c.bf16 %v394_v7, %v393_v0 }
 0x228   :  { %v396_v11 = vadd.f32 %v392_v9, %v254_v39  ;;  %v535_v44 = vpop.permute.xlu0 %534 }
 0x229   :  { %757 = vmatprep.subr.bf16.mxu0 %v756_v10  ;;  %v395_v12 = vadd.f32 %v391_v1, %v253_v40 }
 0x22a   :  { %759 = vmatpush3.bf16.msra.mxu0 %v756_v10 }
 0x22b   :  { %v760_v13 = vpack.c.bf16 %v396_v11, %v395_v12 }
 0x22d   :  { %761 = vmatprep.subr.bf16.mxu0 %v760_v13 }
 0x22e   :  { %763 = vmatpush3.bf16.msra.mxu0 %v760_v13 }
 0x231   :  { %732 = vmatmul.mubr.msk.f32.vlgmr.msra.gmra.mrb[4].mxu0 %vm283_vm12, %v398_v14 }
 0x232   :  { %734 = vmatprep.mubr.msk.f32.mxu0 %vm283_vm12, %v399_v15 }
 0x235   :  { %735 = vmatmul.mubr.msk.f32.gmra.mrb[6].mxu0 %vm283_vm12, %v400_v16 }
 0x304   :  { %v733_v21 = vpop.f32.mrb[4].mxu0 }
 0x305   :  { %v509_v22 = vadd.f32 %v733_v21, %v413_v19  ;;  %v503_v23 = vpop.f32.mrb[5].mxu0 }
 0x306   :  { %v504_v24 = vadd.f32 %v503_v23, %v408_v20 }
 0x307   :  { %v523_v25 = vmul.f32 0.01, %v509_v22 }
 0x308   :  { %v522_v27 = vmul.f32 0.01, %v504_v24  ;;  %v736_v28 = vpop.f32.mrb[6].mxu0 }
 0x309   :  { %v527_v32 = vmax.f32 %v509_v22, %v523_v25  ;;  %v519_v33 = vadd.f32 %v736_v28, %v423_v26  ;;  %v513_v34 = vpop.f32.mrb[7].mxu0 }
 0x30a   :  { %v526_v35 = vmax.f32 %v504_v24, %v522_v27  ;;  %v514_v36 = vadd.f32 %v513_v34, %v418_v31 }
 0x30b   :  { %v525_v37 = vmul.f32 0.01, %v519_v33 }
 0x30c   :  { %v765_v38 = vpack.c.bf16 %v527_v32, %v526_v35  ;;  %v524_v39 = vmul.f32 0.01, %v514_v36 }
 0x30d   :  { %v529_v40 = vmax.f32 %v519_v33, %v525_v37 }
 0x30e   :  { %v528_v41 = vmax.f32 %v514_v36, %v524_v39  ;;  %766 = vmatpush3.bf16.msra.mxu1 %v765_v38 }
 0x30f   :  { %767 = vmatprep.subr.bf16.mxu1 %v812_v17 }
 0x310   :  { %v768_v42 = vpack.c.bf16 %v529_v40, %v528_v41 }
 0x312   :  { %769 = vmatpush3.bf16.msra.mxu1 %v768_v42 }
 0x315   :  { %746 = vmatmul.mubr.msk.f32.vlgmr.msra.gmra.mrb[4].mxu1 %vm283_vm12, %v530_v43 }
 0x3e8   :  { %v606_v45 = vpop.f32.mrb[4].mxu1 }
 0x3e9   :  { %v607_v46 = vadd.f32 %v606_v45, %v535_v44  ;;  %v747_v47 = vpop.f32.mrb[5].mxu1 }
 0x3eb   :  { %v612_v48 = vrot.slane %v607_v46, 1  ;;  %v619_v49 = vrot.slane %v607_v46, 3  ;;  %v616_v50 = vmul.f32 %v607_v46, %v933_v30  ;;  %v622_v51 = vrot.slane %v607_v46, 4 }
 0x3ec   :  { %v610_v60 = vmul.f32 %v607_v46, %v930_v29 }
 0x3ed   :  { %v614_v52 = vmul.f32 %v612_v48, %v941_v55  ;;  %v617_v53 = vmul.f32 %v612_v48, %v943_v56  ;;  %v621_v54 = vmul.f32 %v619_v49, %v930_v29  ;;  %v626_v57 = vmul.f32 %v619_v49, %v933_v30 }
 0x3ee   :  { %v624_v58 = vmul.f32 %v622_v51, %v941_v55  ;;  %v627_v59 = vmul.f32 %v622_v51, %v943_v56 }
 0x3ef   :  { %v618_v61 = vadd.f32 %v617_v53, %v616_v50  ;;  %v615_v2 = vadd.f32 %v614_v52, %v610_v60 }
 0x3f0   :  { %v625_v62 = vadd.f32 %v624_v58, %v621_v54  ;;  %v628_v63 = vadd.f32 %v627_v59, %v626_v57 }
 0x3f1   :  { %v630_v3 = vrot.slane %v618_v61, 7 }
 0x3f2   :  { %v633_v4 = vrot.slane %v625_v62, 5  ;;  %v636_v6 = vrot.slane %v628_v63, 4 }
 0x3f3   :  { %v638_v5 = vsel %vm107_vm6, %v615_v2, %v630_v3 }
 0x3f4   :  { %v639_v7 = vsel %vm109_vm7, %v638_v5, %v607_v46 }
 0x3f5   :  { %v640_v8 = vsel %vm111_vm8, %v639_v7, %v633_v4 }
 0x3f6   :  { %v641_v30 = vsel %vm113_vm9, %v640_v8, %v636_v6 }
 0x3f7   :  { %v642_v29 = vsel %vm115_vm10, %v641_v30, %v607_v46 }
 0x3f8   :  { %v643_v55 = vsel %vm158_vm11, %v642_v29, 0.0 }
 0x3f9   :  { %v645_v56 = vsel %vm644_vm14, %v643_v55, 0.0 }
 0x3fa   :  { %646 = vst [vmem:[#allocation2] sm:$0xff] %v645_v56 }
 0x3fb   :  { %797 = shalt.err (!%p794_p4)
}
 0x3fc   :  { %s798_s23 = scalar_lea.hbm %s1051_s9, 128 }
 0x3fd   :  { %p799_p5 = scmp.ne.s32.totalorder %s1051_s9, %s798_s23  ;;  %p802_p6 = scmp.lt.u32.totalorder %s798_s23, %s1051_s9 }
 0x3ff   :  { %p804_p7 = pnand %p802_p6, %p799_p5 }
 0x401   :  { %807 = shalt.err (!%p804_p7)
}
 0x402   :  { %656 = dma.vmem_to_hbm [thread:$0]  %s654_s21, 128, %s1051_s9, [#allocation3]  }
 0x403   :  { %808 = dma.done.wait [#allocation3], 128  }
 0x404   :  { %809 = vsyncadd [#allocation3], 4294967168 }
 0x405   :  { %660 = vsyncpa [#allocation3], 1 }

</bundles_post_ra>
